<compile_context>
chip_gen: v6e
topology: v6e:2x2x1
jax: 0.10.0
libtpu: 0.0.40
codegen_flags: <defaults>
</compile_context>

<pallas_src>
import jax
import jax.numpy as jnp
from jax.experimental import pallas as pl
from jax.experimental.pallas import tpu as pltpu
import numpy as np

HIDDEN_PAD = 128   # shared-layer width padded 64 -> 128 (lane-dense, free on MXU)


def _mlp_var_kernel(x_ref, w1_ref, b1_ref, w2_ref, b2_ref, wh_ref, bh_ref, o_ref):
    # in-kernel bf16 cast of the streamed f32 input (free VPU work)
    x = x_ref[...].astype(jnp.bfloat16)
    # shared layers: Linear -> ReLU -> Linear -> ReLU
    # matmuls: bf16 operands, f32 accumulation (MXU); epilogue in f32 (VPU/EUP)
    h1 = jnp.dot(x, w1_ref[...], preferred_element_type=jnp.float32)
    h1 = jnp.maximum(h1 + b1_ref[...], 0.0)
    h2 = jnp.dot(h1.astype(jnp.bfloat16), w2_ref[...],
                 preferred_element_type=jnp.float32)
    h2 = jnp.maximum(h2 + b2_ref[...], 0.0)
    # fused heads: one matmul producing exactly AR = num_actions*reward_dim cols
    z = jnp.dot(h2.astype(jnp.bfloat16), wh_ref[...],
                preferred_element_type=jnp.float32) + bh_ref[...]
    # ParametricSoftplus with beta pre-folded into wh/bh: stable softplus(z)
    o_ref[...] = jnp.maximum(z, 0.0) + jnp.log1p(jnp.exp(-jnp.abs(z)))


def _round_up(x, m):
    return ((x + m - 1) // m) * m


def _choose_batch_tile(B, tb_cap):
    """Batch tile: multiple of 8, <= tb_cap, and >= 2 grid steps when B > 8
    so the 'parallel' batch axis can shard across v7x's two TensorCores."""
    if B <= 8:
        return B  # block equals the full dim -> always legal
    return min(tb_cap, max(8, _round_up(pl.cdiv(B, 2), 8)))


def multidim_var_forward(x, prepared_params, num_actions, reward_dim, tb=2048):
    """x: (B, state_dim) float32 -> (B, num_actions, reward_dim) float32."""
    w1, b1, w2, b2, wh, bh = prepared_params
    B, S = x.shape
    AR = num_actions * reward_dim
    assert wh.shape == (HIDDEN_PAD, AR) and bh.shape == (1, AR)

    TB = _choose_batch_tile(B, tb)
    grid = (pl.cdiv(B, TB),)

    out = pl.pallas_call(
        _mlp_var_kernel,
        out_shape=jax.ShapeDtypeStruct((B, AR), jnp.float32),
        grid=grid,
        in_specs=[
            # streamed f32 input tile (bf16 cast happens inside the kernel)
            pl.BlockSpec((TB, S), lambda i: (i, 0)),
            # resident weights / biases (constant index maps -> fetched once)
            pl.BlockSpec((S, HIDDEN_PAD), lambda i: (0, 0)),
            pl.BlockSpec((1, HIDDEN_PAD), lambda i: (0, 0)),
            pl.BlockSpec((HIDDEN_PAD, HIDDEN_PAD), lambda i: (0, 0)),
            pl.BlockSpec((1, HIDDEN_PAD), lambda i: (0, 0)),
            pl.BlockSpec((HIDDEN_PAD, AR), lambda i: (0, 0)),
            pl.BlockSpec((1, AR), lambda i: (0, 0)),
        ],
        # narrow (TB, AR) output -> ~10x fewer write bytes than 128-lane padding,
        # and no post-kernel slice pass
        out_specs=pl.BlockSpec((TB, AR), lambda i: (i, 0)),
        compiler_params=pltpu.CompilerParams(
            dimension_semantics=("parallel",)),
    )(x, w1, b1, w2, b2, wh, bh)

    # column a*reward_dim + r  <=>  torch.stack(dim=-1); reshape is metadata-only
    return out.reshape(B, num_actions, reward_dim)


def init_params(key, state_dim, num_actions, reward_dim, hidden=64):
    """Unpadded f32 params mimicking PyTorch's default uniform(-1/sqrt(fan_in))."""
    ks = jax.random.split(key, 8)

    def lin(kw, kb, fan_in, fan_out):
        bound = 1.0 / jnp.sqrt(fan_in)
        w = jax.random.uniform(kw, (fan_in, fan_out), jnp.float32, -bound, bound)
        b = jax.random.uniform(kb, (1, fan_out), jnp.float32, -bound, bound)
        return w, b

    w1, b1 = lin(ks[0], ks[1], state_dim, hidden)
    w2, b2 = lin(ks[2], ks[3], hidden, hidden)

    # reward_dim separate heads (hidden -> num_actions), fused into one matrix.
    head_ws, head_bs = [], []
    hkeys = jax.random.split(ks[4], 2 * reward_dim)
    for r in range(reward_dim):
        wr, br = lin(hkeys[2 * r], hkeys[2 * r + 1], hidden, num_actions)
        head_ws.append(wr)                # (hidden, num_actions)
        head_bs.append(br.reshape(-1))    # (num_actions,)
    # fused: column a*reward_dim + r  <=>  torch.stack(dim=-1)
    wh = jnp.stack(head_ws, axis=-1).reshape(hidden, num_actions * reward_dim)
    bh = jnp.stack(head_bs, axis=-1).reshape(1, num_actions * reward_dim)

    beta = jnp.ones((1, 1), jnp.float32)  # ParametricSoftplus beta init = 1
    return (w1, b1, w2, b2, wh, bh, beta)


def prepare_params(params):
    """Pad shared layers to lane-dense 128 width, fold beta into the fused head,
    cast matmul weights to bf16 (one-time)."""
    w1, b1, w2, b2, wh, bh, beta = params

    def pad2(a, rows, cols):
        return jnp.pad(a, ((0, rows - a.shape[0]), (0, cols - a.shape[1])))

    S, H = w1.shape
    AR = wh.shape[1]
    beta_s = beta[0, 0]

    w1p = pad2(w1, S, HIDDEN_PAD).astype(jnp.bfloat16)
    b1p = pad2(b1, 1, HIDDEN_PAD)                      # f32 (epilogue)
    w2p = pad2(w2, HIDDEN_PAD, HIDDEN_PAD).astype(jnp.bfloat16)
    b2p = pad2(b2, 1, HIDDEN_PAD)
    # fold beta: softplus(beta*(h@wh + bh)) == softplus(h@(beta*wh) + beta*bh)
    whp = pad2(wh * beta_s, HIDDEN_PAD, AR).astype(jnp.bfloat16)
    bhp = (bh * beta_s).astype(jnp.float32)            # (1, AR) f32
    return (w1p, b1p, w2p, b2p, whp, bhp)


def reference_forward(x, params, num_actions, reward_dim):
    """Pure-JAX f32 reference mirroring the PyTorch module (unpadded params)."""
    w1, b1, w2, b2, wh, bh, beta = params
    h = jnp.maximum(x @ w1 + b1, 0.0)
    h = jnp.maximum(h @ w2 + b2, 0.0)
    z = beta[0, 0] * (h @ wh + bh)
    sp = jnp.maximum(z, 0.0) + jnp.log1p(jnp.exp(-jnp.abs(z)))
    return sp.reshape(x.shape[0], num_actions, reward_dim)


if __name__ == "__main__":
    state_dim = 16
    num_actions = 4
    reward_dim = 3

    key = jax.random.PRNGKey(0)
    kx1, kx2, kp = jax.random.split(key, 3)
    params = init_params(kp, state_dim, num_actions, reward_dim)
    prepared = prepare_params(params)

    # small single-block case
    batch = 8
    x = jax.random.normal(kx1, (batch, state_dim), jnp.float32)
    out = jax.block_until_ready(
        multidim_var_forward(x, prepared, num_actions, reward_dim))
    ref = reference_forward(x, params, num_actions, reward_dim)
    assert out.shape == (batch, num_actions, reward_dim)
    # bf16 matmul operands (f32 accumulation) -> loosened tolerance vs f32 ref
    assert np.allclose(np.asarray(out), np.asarray(ref), atol=3e-2, rtol=3e-2)

    # multi-step grid with a partial last block (exercises the main-path tiling)
    batch2 = 20
    x2 = jax.random.normal(kx2, (batch2, state_dim), jnp.float32)
    out2 = jax.block_until_ready(
        multidim_var_forward(x2, prepared, num_actions, reward_dim))
    ref2 = reference_forward(x2, params, num_actions, reward_dim)
    assert out2.shape == (batch2, num_actions, reward_dim)
    assert np.allclose(np.asarray(out2), np.asarray(ref2), atol=3e-2, rtol=3e-2)

    print("KERNEL_OK")
</pallas_src>

<mosaic_0001>
module attributes {stable_mosaic.version = 11 : i64} {
  func.func @_mlp_var_kernel(%arg0: i32, %arg1: memref<8x16xf32, #tpu.memory_space<vmem>>, %arg2: memref<16x128xbf16, #tpu.memory_space<vmem>>, %arg3: memref<1x128xf32, #tpu.memory_space<vmem>>, %arg4: memref<128x128xbf16, #tpu.memory_space<vmem>>, %arg5: memref<1x128xf32, #tpu.memory_space<vmem>>, %arg6: memref<128x12xbf16, #tpu.memory_space<vmem>>, %arg7: memref<1x12xf32, #tpu.memory_space<vmem>>, %arg8: memref<8x12xf32, #tpu.memory_space<vmem>>) attributes {dimension_semantics = [#tpu.dimension_semantics<parallel>], iteration_bounds = array<i64: 1>, scalar_prefetch = 0 : i64, scratch_operands = 0 : i64, tpu.core_type = #tpu.core_type<tc>, window_params = [{transform_indices = @transform_0, window_bounds = array<i64: 8, 16>}, {pipeline_mode = #tpu.pipeline_mode<synchronous>, transform_indices = @transform_1, window_bounds = array<i64: 16, 128>}, {pipeline_mode = #tpu.pipeline_mode<synchronous>, transform_indices = @transform_2, window_bounds = array<i64: 1, 128>}, {pipeline_mode = #tpu.pipeline_mode<synchronous>, transform_indices = @transform_3, window_bounds = array<i64: 128, 128>}, {pipeline_mode = #tpu.pipeline_mode<synchronous>, transform_indices = @transform_4, window_bounds = array<i64: 1, 128>}, {pipeline_mode = #tpu.pipeline_mode<synchronous>, transform_indices = @transform_5, window_bounds = array<i64: 128, 12>}, {pipeline_mode = #tpu.pipeline_mode<synchronous>, transform_indices = @transform_6, window_bounds = array<i64: 1, 12>}, {transform_indices = @transform_7, window_bounds = array<i64: 8, 12>}]} {
    %c0 = arith.constant 0 : index
    %c0_0 = arith.constant 0 : index
    %0 = vector.load %arg1[%c0, %c0_0] : memref<8x16xf32, #tpu.memory_space<vmem>>, vector<8x16xf32>
    %1 = arith.truncf %0 : vector<8x16xf32> to vector<8x16xbf16>
    %c0_1 = arith.constant 0 : index
    %c0_2 = arith.constant 0 : index
    %2 = vector.load %arg2[%c0_1, %c0_2] : memref<16x128xbf16, #tpu.memory_space<vmem>>, vector<16x128xbf16>
    %cst = arith.constant dense<0.000000e+00> : vector<8x128xf32>
    %3 = tpu.matmul %1, %2, %cst {dimension_numbers = #tpu.dot_dimension_numbers<[1], [0], [0], [1], [0, 0, 1, 1], [], []>} : vector<8x16xbf16>, vector<16x128xbf16>, vector<8x128xf32> -> vector<8x128xf32>
    %c0_3 = arith.constant 0 : index
    %c0_4 = arith.constant 0 : index
    %4 = vector.load %arg3[%c0_3, %c0_4] : memref<1x128xf32, #tpu.memory_space<vmem>>, vector<1x128xf32>
    %5 = vector.broadcast %4 : vector<1x128xf32> to vector<8x128xf32>
    %6 = arith.addf %3, %5 : vector<8x128xf32>
    %cst_5 = arith.constant 0.000000e+00 : f32
    %7 = vector.broadcast %cst_5 : f32 to vector<8x128xf32>
    %8 = arith.maximumf %6, %7 : vector<8x128xf32>
    %9 = arith.truncf %8 : vector<8x128xf32> to vector<8x128xbf16>
    %c0_6 = arith.constant 0 : index
    %c0_7 = arith.constant 0 : index
    %10 = vector.load %arg4[%c0_6, %c0_7] : memref<128x128xbf16, #tpu.memory_space<vmem>>, vector<128x128xbf16>
    %cst_8 = arith.constant dense<0.000000e+00> : vector<8x128xf32>
    %11 = tpu.matmul %9, %10, %cst_8 {dimension_numbers = #tpu.dot_dimension_numbers<[1], [0], [0], [1], [0, 0, 1, 1], [], []>} : vector<8x128xbf16>, vector<128x128xbf16>, vector<8x128xf32> -> vector<8x128xf32>
    %c0_9 = arith.constant 0 : index
    %c0_10 = arith.constant 0 : index
    %12 = vector.load %arg5[%c0_9, %c0_10] : memref<1x128xf32, #tpu.memory_space<vmem>>, vector<1x128xf32>
    %13 = vector.broadcast %12 : vector<1x128xf32> to vector<8x128xf32>
    %14 = arith.addf %11, %13 : vector<8x128xf32>
    %cst_11 = arith.constant 0.000000e+00 : f32
    %15 = vector.broadcast %cst_11 : f32 to vector<8x128xf32>
    %16 = arith.maximumf %14, %15 : vector<8x128xf32>
    %17 = arith.truncf %16 : vector<8x128xf32> to vector<8x128xbf16>
    %c0_12 = arith.constant 0 : index
    %c0_13 = arith.constant 0 : index
    %18 = vector.load %arg6[%c0_12, %c0_13] : memref<128x12xbf16, #tpu.memory_space<vmem>>, vector<128x12xbf16>
    %cst_14 = arith.constant dense<0.000000e+00> : vector<8x12xf32>
    %19 = tpu.matmul %17, %18, %cst_14 {dimension_numbers = #tpu.dot_dimension_numbers<[1], [0], [0], [1], [0, 0, 1, 1], [], []>} : vector<8x128xbf16>, vector<128x12xbf16>, vector<8x12xf32> -> vector<8x12xf32>
    %c0_15 = arith.constant 0 : index
    %c0_16 = arith.constant 0 : index
    %20 = vector.load %arg7[%c0_15, %c0_16] : memref<1x12xf32, #tpu.memory_space<vmem>>, vector<1x12xf32>
    %21 = vector.broadcast %20 : vector<1x12xf32> to vector<8x12xf32>
    %22 = arith.addf %19, %21 : vector<8x12xf32>
    %cst_17 = arith.constant 0.000000e+00 : f32
    %23 = vector.broadcast %cst_17 : f32 to vector<8x12xf32>
    %24 = arith.maximumf %22, %23 : vector<8x12xf32>
    %25 = math.absf %22 : vector<8x12xf32>
    %cst_18 = arith.constant 0.000000e+00 : f32
    %26 = vector.broadcast %cst_18 : f32 to vector<8x12xf32>
    %27 = arith.subf %26, %25 : vector<8x12xf32>
    %28 = math.exp %27 : vector<8x12xf32>
    %29 = math.log1p %28 : vector<8x12xf32>
    %30 = arith.addf %24, %29 : vector<8x12xf32>
    %c0_19 = arith.constant 0 : index
    %c0_20 = arith.constant 0 : index
    %31 = vector.load %arg8[%c0_19, %c0_20] : memref<8x12xf32, #tpu.memory_space<vmem>>, vector<8x12xf32>
    tpu.vector_store %arg8[%c0_19, %c0_20], %30 {strides = array<i32>} : memref<8x12xf32, #tpu.memory_space<vmem>>, vector<8x12xf32>,
    return
  }
  func.func @transform_0(%arg0: i32) -> (i32, i32) {
    %c0_i32 = arith.constant 0 : i32
    %c0_i32_0 = arith.constant 0 : i32
    return %arg0, %c0_i32 : i32, i32
  }
  func.func @transform_1(%arg0: i32) -> (i32, i32) {
    %c0_i32 = arith.constant 0 : i32
    %c0_i32_0 = arith.constant 0 : i32
    %c0_i32_1 = arith.constant 0 : i32
    return %c0_i32, %c0_i32_0 : i32, i32
  }
  func.func @transform_2(%arg0: i32) -> (i32, i32) {
    %c0_i32 = arith.constant 0 : i32
    %c0_i32_0 = arith.constant 0 : i32
    %c0_i32_1 = arith.constant 0 : i32
    return %c0_i32, %c0_i32_0 : i32, i32
  }
  func.func @transform_3(%arg0: i32) -> (i32, i32) {
    %c0_i32 = arith.constant 0 : i32
    %c0_i32_0 = arith.constant 0 : i32
    %c0_i32_1 = arith.constant 0 : i32
    return %c0_i32, %c0_i32_0 : i32, i32
  }
  func.func @transform_4(%arg0: i32) -> (i32, i32) {
    %c0_i32 = arith.constant 0 : i32
    %c0_i32_0 = arith.constant 0 : i32
    %c0_i32_1 = arith.constant 0 : i32
    return %c0_i32, %c0_i32_0 : i32, i32
  }
  func.func @transform_5(%arg0: i32) -> (i32, i32) {
    %c0_i32 = arith.constant 0 : i32
    %c0_i32_0 = arith.constant 0 : i32
    %c0_i32_1 = arith.constant 0 : i32
    return %c0_i32, %c0_i32_0 : i32, i32
  }
  func.func @transform_6(%arg0: i32) -> (i32, i32) {
    %c0_i32 = arith.constant 0 : i32
    %c0_i32_0 = arith.constant 0 : i32
    %c0_i32_1 = arith.constant 0 : i32
    return %c0_i32, %c0_i32_0 : i32, i32
  }
  func.func @transform_7(%arg0: i32) -> (i32, i32) {
    %c0_i32 = arith.constant 0 : i32
    %c0_i32_0 = arith.constant 0 : i32
    return %arg0, %c0_i32 : i32, i32
  }
}

</mosaic_0001>

<bundles_post_ra>
// kernel: tpu_custom_call.1
= control target key start
LH: loop header
LB: loop body
LE: loop exit
PB: predicated region body
PF: predicated region fallthrough
CT: control target
= control target key end

     0   :  { %12 = vsyncpa [#allocation3], 0  ;;  %s688_s0 = inlined_call_operand.vmem [shape: f32[8,16], index: 0, kind: input, shape index: {}]   ;;  %s689_s1 = inlined_call_operand.hbm [shape: bf16[16,128], index: 1, kind: input, shape index: {}]   ;;  %s690_s2 = inlined_call_operand.vmem [shape: f32[1,128], index: 2, kind: input, shape index: {}]   ;;  %s691_s3 = inlined_call_operand.vmem [shape: bf16[128,128], index: 3, kind: input, shape index: {}]   ;;  %s692_s4 = inlined_call_operand.hbm [shape: f32[1,128], index: 4, kind: input, shape index: {}]   ;;  %s693_s5 = inlined_call_operand.vmem [shape: bf16[128,12], index: 5, kind: input, shape index: {}]   ;;  %s694_s6 = inlined_call_operand.vmem [shape: f32[1,12], index: 6, kind: input, shape index: {}]   ;;  %s695_s7 = inlined_call_operand.hbm [shape: f32[8,12], index: 7, kind: output, shape index: {}]  }
   0x1   :  { %13 = vsyncpa [#allocation6], 0 }
   0x2   :  { %14 = vsyncpa [#allocation4], 0  ;;  %s555_s24 = smov [#allocation2]  }
   0x3   :  { %s22_s25 = sshll.u32 %s555_s24, 4  ;;  %s23_s25 = int_to_ptr.vmem [resolvable:$true] %s22_s25 }
   0x4   :  { %s497_s26 = scalar_lea.vmem %s23_s25, 128  ;;  %p502_p1 = scmp.lt.s32.totalorder %s23_s25, %s23_s25 }
   0x5   :  { %p498_p0 = scmp.ne.s32.totalorder %s23_s25, %s497_s26  ;;  %p503_p2 = scmp.lt.s32.totalorder %s497_s26, %s497_s26 }
   0x7   :  { %p504_p3 = por %p503_p2, %p502_p1 }
   0x9   :  { %p505_p4 = pnand %p504_p3, %p498_p0 }
   0xb   :  { %508 = shalt.err (!%p505_p4)
}
   0xc   :  { %s556_s27 = smov 64   ;;  %s557_s28 = smov 4  }
   0xd   :  { %28 = dma.hbm_to_vmem [thread:$0]  %s689_s1, 128, %s23_s25, [#allocation3], %s556_s27, %s556_s27, %s557_s28  }
   0xe   :  { %s558_s8 = smov [#allocation5]  }
   0xf   :  { %s39_s9 = sshll.u32 %s558_s8, 4  ;;  %s40_s9 = int_to_ptr.vmem [resolvable:$true] %s39_s9 }
  0x10   :  { %s517_s10 = scalar_lea.vmem %s40_s9, 16  ;;  %s521_s11 = scalar_lea.vmem %s40_s9, 32 }
  0x11   :  { %p518_p5 = scmp.ne.s32.totalorder %s40_s9, %s517_s10  ;;  %p522_p6 = scmp.lt.s32.totalorder %s40_s9, %s40_s9 }
  0x12   :  { %p523_p7 = scmp.lt.s32.totalorder %s521_s11, %s517_s10 }
  0x14   :  { %p524_p8 = por %p523_p7, %p522_p6 }
  0x16   :  { %p525_p9 = pnand %p524_p8, %p518_p5 }
  0x18   :  { %528 = shalt.err (!%p525_p9)
}
  0x19   :  { %42 = dma.hbm_to_vmem [thread:$0]  %s692_s4, 16, %s40_s9, [#allocation6]  }
  0x1a   :  { %549 = dma.done.wait [#allocation3], 128  }
  0x1b   :  { %550 = vsyncadd [#allocation3], 4294967168 }
  0x1c   :  { %551 = dma.done.wait [#allocation6], 16  }
  0x1d   :  { %552 = vsyncadd [#allocation6], 4294967280  ;;  %v559_v0 = vmov 0.0   ;;  %vm560_vm0 = vmmov 0   ;;  %v468_v1 = vld [vmem:[#allocation2] sm:$0xff]   ;;  %vm71_vm1 = vcmask 130048  }
  0x1e   :  { %415 = vmatprep.subr.bf16.mxu0 %v559_v0  ;;  %417 = vmatprep.mubr.msk.bf16.mxu0 %vm560_vm0, %v559_v0  ;;  %v54_v2 = vld [vmem:[%s688_s0] sm:$0xff]  ;;  %v469_v4 = vld [vmem:[%s691_s3 + $0x38] sm:$0xff]   ;;  %v470_v5 = vld [vmem:[%s691_s3 + $0x30] sm:$0xff]   ;;  %vm356_vm3 = vcmask 97280  }
  0x1f   :  { %421 = vmatprep.subr.bf16.mxu1 %v559_v0  ;;  %437 = vmatprep.mubr.msk.bf16.mxu1 %vm560_vm0, %v559_v0  ;;  %v55_v3 = vpack.c.bf16 %v54_v2, %v54_v2  ;;  %v471_v6 = vld [vmem:[%s691_s3 + $0x28] sm:$0xff]   ;;  %v472_v7 = vld [vmem:[%s691_s3 + $0x20] sm:$0xff]   ;;  %v473_v8 = vld [vmem:[%s691_s3 + $0x18] sm:$0xff]  }
  0x20   :  { %416 = vmatpush3.bf16.msra.mxu0 %v468_v1  ;;  %422 = vmatpush3.bf16.msra.mxu1 %v469_v4  ;;  %v474_v9 = vld [vmem:[%s691_s3 + $0x10] sm:$0xff]   ;;  %v475_v10 = vld [vmem:[%s691_s3 + $0x8] sm:$0xff]   ;;  %v476_v11 = vld [vmem:[%s691_s3] sm:$0xff]  }
  0x21   :  { %441 = vmatprep.subr.bf16.mxu0 %v559_v0  ;;  %423 = vmatprep.subr.bf16.mxu1 %v559_v0  ;;  %v477_v12 = vld [vmem:[%s693_s5 + $0x38] sm:$0xff]   ;;  %v478_v13 = vld [vmem:[%s693_s5 + $0x30] sm:$0xff]   ;;  %v479_v14 = vld [vmem:[%s693_s5 + $0x28] sm:$0xff]  }
  0x22   :  { %v480_v15 = vld [vmem:[%s693_s5 + $0x20] sm:$0xff]   ;;  %v481_v16 = vld [vmem:[%s693_s5 + $0x18] sm:$0xff]   ;;  %v482_v17 = vld [vmem:[%s693_s5 + $0x10] sm:$0xff]  }
  0x23   :  { %418 = vmatmul.mubr.msk.bf16.vlgmr.msra.gmra.mxu0 %vm71_vm1, %v55_v3  ;;  %v374_v18 = vld [vmem:[%s690_s2] ss:$0 sm:$0xff]  ;;  %v483_v26 = vld [vmem:[%s693_s5 + $0x8] sm:$0xff]  }
  0x24   :  { %457 = vmatprep.mubr.msk.bf16.mxu0 %vm560_vm0, %v559_v0  ;;  %424 = vmatpush3.bf16.msra.mxu1 %v470_v5  ;;  %v484_v27 = vld [vmem:[%s693_s5] sm:$0xff]   ;;  %v377_v28 = vld [vmem:[#allocation5] ss:$0 sm:$0xff]  ;;  %s561_s5 = smov [#allocation7]  }
  0x25   :  { %425 = vmatprep.subr.bf16.mxu1 %v559_v0  ;;  %442 = vmatpush3.bf16.msra.mxu0 %v477_v12  ;;  %v386_v36 = vld [vmem:[%s694_s6] ss:$0 sm:$0xff]  ;;  %s364_s6 = sshll.u32 %s561_s5, 4  ;;  %s365_s6 = int_to_ptr.vmem [resolvable:$true] %s364_s6 }
  0x26   :  { %443 = vmatprep.subr.bf16.mxu0 %v559_v0  ;;  %s529_s21 = scalar_lea.vmem %s365_s6, 128  ;;  %p534_p11 = scmp.lt.s32.totalorder %s365_s6, %s365_s6 }
  0x27   :  { %p530_p10 = scmp.ne.s32.totalorder %s365_s6, %s529_s21  ;;  %p535_p12 = scmp.lt.s32.totalorder %s529_s21, %s529_s21 }
  0x28   :  { %426 = vmatpush3.bf16.msra.mxu1 %v471_v6 }
  0x29   :  { %427 = vmatprep.subr.bf16.mxu1 %v559_v0  ;;  %444 = vmatpush3.bf16.msra.mxu0 %v478_v13  ;;  %p536_p13 = por %p535_p12, %p534_p11 }
  0x2a   :  { %445 = vmatprep.subr.bf16.mxu0 %v559_v0 }
  0x2b   :  { %p537_p0 = pnand %p536_p13, %p530_p10 }
  0x2c   :  { %428 = vmatpush3.bf16.msra.mxu1 %v472_v7 }
  0x2d   :  { %429 = vmatprep.subr.bf16.mxu1 %v559_v0  ;;  %446 = vmatpush3.bf16.msra.mxu0 %v479_v14 }
  0x2e   :  { %447 = vmatprep.subr.bf16.mxu0 %v559_v0 }
  0x30   :  { %430 = vmatpush3.bf16.msra.mxu1 %v473_v8 }
  0x31   :  { %431 = vmatprep.subr.bf16.mxu1 %v559_v0  ;;  %448 = vmatpush3.bf16.msra.mxu0 %v480_v15 }
  0x32   :  { %449 = vmatprep.subr.bf16.mxu0 %v559_v0 }
  0x34   :  { %432 = vmatpush3.bf16.msra.mxu1 %v474_v9 }
  0x35   :  { %433 = vmatprep.subr.bf16.mxu1 %v559_v0  ;;  %450 = vmatpush3.bf16.msra.mxu0 %v481_v16 }
  0x36   :  { %451 = vmatprep.subr.bf16.mxu0 %v559_v0 }
  0x38   :  { %434 = vmatpush3.bf16.msra.mxu1 %v475_v10 }
  0x39   :  { %435 = vmatprep.subr.bf16.mxu1 %v559_v0  ;;  %452 = vmatpush3.bf16.msra.mxu0 %v482_v17 }
  0x3a   :  { %453 = vmatprep.subr.bf16.mxu0 %v559_v0 }
  0x3c   :  { %436 = vmatpush3.bf16.msra.mxu1 %v476_v11 }
  0x3d   :  { %454 = vmatpush3.bf16.msra.mxu0 %v483_v26 }
  0x3e   :  { %455 = vmatprep.subr.bf16.mxu0 %v559_v0 }
  0x41   :  { %456 = vmatpush3.bf16.msra.mxu0 %v484_v27 }
  0xe3   :  { %v109_v19 = vpop.f32.mrf.mxu0 }
  0xe4   :  { %v110_v20 = vadd.f32 %v374_v18, %v109_v19 }
  0xe5   :  { %v419_v21 = vpop.f32.mrf.mxu0 }
  0xe6   :  { %v115_v22 = vmax.f32 %v110_v20, 0.0 }
  0xe7   :  { %v112_v23 = vpop.f32.mrf.mxu0 }
  0xe8   :  { %v116_v24 = vpack.c.bf16 %v115_v22, %v115_v22 }
  0xe9   :  { %v420_v25 = vpop.f32.mrf.mxu0 }
  0xea   :  { %438 = vmatmul.mubr.bf16.vlgmr.msra.gmra.mxu1 %v116_v24 }
 0x1aa   :  { %v222_v29 = vpop.f32.mrf.mxu1 }
 0x1ab   :  { %v223_v30 = vadd.f32 %v377_v28, %v222_v29 }
 0x1ac   :  { %v439_v31 = vpop.f32.mrf.mxu1 }
 0x1ad   :  { %v228_v32 = vmax.f32 %v223_v30, 0.0 }
 0x1ae   :  { %v225_v33 = vpop.f32.mrf.mxu1 }
 0x1af   :  { %v229_v34 = vpack.c.bf16 %v228_v32, %v228_v32 }
 0x1b0   :  { %v440_v35 = vpop.f32.mrf.mxu1 }
 0x1b1   :  { %458 = vmatmul.mubr.bf16.vlgmr.msra.gmra.mxu0 %v229_v34 }
 0x271   :  { %v335_v37 = vpop.f32.mrf.mxu0 }
 0x272   :  { %v336_v38 = vadd.f32 %v386_v36, %v335_v37 }
 0x273   :  { %v459_v39 = vpop.f32.mrf.mxu0 }
 0x274   :  { %v342_v40 = vand.u32 2147483647, %v336_v38  ;;  %v341_v53 = vmax.f32 %v336_v38, 0.0 }
 0x275   :  { %v338_v41 = vpop.f32.mrf.mxu0 }
 0x276   :  { %v343_v42 = vsub.f32 0.0, %v342_v40 }
 0x277   :  { %v460_v43 = vpop.f32.mrf.mxu0 }
 0x278   :  { %v344_v44 = vmul.f32 1.442695, %v343_v42 }
 0x27a   :  { %485 = vpow2.f32 %v344_v44 }
 0x287   :  { %v486_v45 = vpop.eup %485 }
 0x288   :  { %v346_v46 = vadd.f32 1.0, %v486_v45  ;;  %v349_v47 = vmul.f32 -0.5, %v486_v45  ;;  %v352_v49 = vand.u32 2147483647, %v486_v45 }
 0x28a   :  { %487 = vlog2.f32 %v346_v46  ;;  %v350_v48 = vadd.f32 1.0, %v349_v47  ;;  %vm353_vm2 = vcmp.lt.f32.partialorder %v352_v49, 0.0004427343 }
 0x28c   :  { %v351_v52 = vmul.f32 %v486_v45, %v350_v48 }
 0x297   :  { %v488_v50 = vpop.eup %487 }
 0x298   :  { %v348_v51 = vmul.f32 0.6931472, %v488_v50 }
 0x29a   :  { %v354_v54 = vsel %vm353_vm2, %v351_v52, %v348_v51 }
 0x29b   :  { %v355_v55 = vadd.f32 %v354_v54, %v341_v53 }
 0x29d   :  { %357 = vst.msk [vmem:[#allocation7] sm:$0xff] %vm356_vm3, %v355_v55 }
 0x29e   :  { %540 = shalt.err (!%p537_p0)
}
 0x29f   :  { %367 = dma.vmem_to_hbm [thread:$0]  %s365_s6, 128, %s695_s7, [#allocation4]  }
 0x2a0   :  { %553 = dma.done.wait [#allocation4], 128  }
 0x2a1   :  { %554 = vsyncadd [#allocation4], 4294967168 }
 0x2a2   :  { %371 = vsyncpa [#allocation3], 1 }
 0x2a3   :  { %372 = vsyncpa [#allocation6], 1 }
 0x2a4   :  { %373 = vsyncpa [#allocation4], 1 }

</bundles_post_ra>
